<compile_context>
chip_gen: v7x
topology: tpu7x:2x2x1
jax: 0.10.0
libtpu: 0.0.40
codegen_flags: <defaults>
</compile_context>

<pallas_src>
import math
import functools

import jax
import jax.numpy as jnp
from jax.experimental import pallas as pl
from jax.experimental.pallas import tpu as pltpu


# ----------------------------------------------------------------------------
# Pallas kernel (one batch element per grid step)
# ----------------------------------------------------------------------------
def sparse_mha_kernel(x_ref, wqkv_ref, bqkv_ref, wo_ref, bo_ref, out_ref,
                      *, num_heads, d_k, d_model, window_size, global_tokens):
    S = x_ref.shape[1]
    D = d_model

    x = x_ref[0]                                              # (S, D) f32

    # Fused Q/K/V projection: single MXU matmul with N = 3D.
    qkv = jnp.dot(x, wqkv_ref[...],
                  preferred_element_type=jnp.float32) + bqkv_ref[...]   # (S, 3D)
    q = qkv[:, 0 * D:1 * D]
    k = qkv[:, 1 * D:2 * D]
    v = qkv[:, 2 * D:3 * D]

    # (S, D) -> (H, S, d_k): one reshape + transpose per tensor (instead of
    # 2*num_heads narrow lane slices + a concat).
    def to_heads(t):
        return t.reshape(S, num_heads, d_k).transpose(1, 0, 2)

    Qh = to_heads(q)                                          # (H, S, d_k)
    Kh = to_heads(k)
    Vh = to_heads(v)

    scale = jnp.float32(1.0 / math.sqrt(d_k))

    # Batched QK^T over the head axis; contraction over the last dims of both
    # operands -> no explicit K transpose (no XLU vxpose per head).
    scores = jnp.einsum("hqd,hkd->hqk", Qh, Kh,
                        preferred_element_type=jnp.float32) * scale     # (H, S, S)

    # In-kernel local-window / global-token mask (two iota compares on VPU;
    # no dense (S,S) float mask input).
    i = jax.lax.broadcasted_iota(jnp.int32, (S, S), 0)
    j = jax.lax.broadcasted_iota(jnp.int32, (S, S), 1)
    keep = (j >= i - window_size) & (j <= i + window_size)
    if global_tokens > 0:
        keep = keep | (i < global_tokens) | (j < global_tokens)
    # Every row keeps at least j == i (and global tokens), so exp(-inf) rows
    # cannot occur and the softmax never NaNs.
    scores = jnp.where(keep[None, :, :], scores, jnp.float32(-jnp.inf))

    # Numerically stable softmax along the key axis; reciprocal on the EUP.
    m = jnp.max(scores, axis=-1, keepdims=True)
    p = jnp.exp(scores - m)
    denom = jnp.sum(p, axis=-1, keepdims=True)
    probs = p * pl.reciprocal(denom, approx=True)
    # TODO(synk): attention-probs dropout omitted (eval-mode identity).

    # Batched P @ V over the head axis -> (H, S, d_k).
    ctx = jnp.einsum("hqk,hkd->hqd", probs, Vh,
                     preferred_element_type=jnp.float32)

    # (H, S, d_k) -> (S, D)  (matches transpose(1,2).view in PyTorch).
    concat = ctx.transpose(1, 0, 2).reshape(S, D)

    # Output projection against the lane-padded (D, 128k) weight -> the store
    # below is a full-width (unmasked) vst.
    out = jnp.dot(concat, wo_ref[...],
                  preferred_element_type=jnp.float32) + bo_ref[...]     # (S, Dpad)
    out_ref[0] = out.astype(out_ref.dtype)


# ----------------------------------------------------------------------------
# Wrapper (self-attention path: query = key = value = x)
# ----------------------------------------------------------------------------
def sparse_mha_forward(x, params, *, num_heads, window_size, global_tokens):
    B, S, D = x.shape
    d_k = D // num_heads

    # Fuse Q/K/V weights -> (D, 3D), biases -> (1, 3D).
    wqkv = jnp.concatenate([params["wq"], params["wk"], params["wv"]], axis=1)
    bqkv = jnp.concatenate([params["bq"], params["bk"], params["bv"]], axis=1)

    # Pad the output projection to a multiple of 128 lanes (lane-dense store).
    Dp = ((D + 127) // 128) * 128
    wo_p = jnp.zeros((D, Dp), jnp.float32).at[:, :D].set(params["wo"])
    bo_p = jnp.zeros((1, Dp), jnp.float32).at[:, :D].set(params["bo"])

    kernel = functools.partial(
        sparse_mha_kernel,
        num_heads=num_heads, d_k=d_k, d_model=D,
        window_size=window_size, global_tokens=global_tokens)

    out_padded = pl.pallas_call(
        kernel,
        out_shape=jax.ShapeDtypeStruct((B, S, Dp), jnp.float32),
        grid_spec=pltpu.PrefetchScalarGridSpec(
            num_scalar_prefetch=0,
            grid=(B,),
            in_specs=[
                pl.BlockSpec((1, S, D), lambda b: (b, 0, 0)),    # x (once)
                pl.BlockSpec((D, 3 * D), lambda b: (0, 0)),      # fused W_qkv
                pl.BlockSpec((1, 3 * D), lambda b: (0, 0)),      # fused b_qkv
                pl.BlockSpec((D, Dp), lambda b: (0, 0)),         # W_out (padded)
                pl.BlockSpec((1, Dp), lambda b: (0, 0)),         # b_out (padded)
            ],
            out_specs=pl.BlockSpec((1, S, Dp), lambda b: (b, 0, 0)),
        ),
        compiler_params=pltpu.CompilerParams(
            dimension_semantics=("parallel",)),  # batch axis shards across TCs
    )(x, wqkv, bqkv, wo_p, bo_p)

    return out_padded[:, :, :D]


# ----------------------------------------------------------------------------
# Pure-JAX reference (mirrors the PyTorch forward, eval mode, no cache)
# ----------------------------------------------------------------------------
def build_local_window_mask(seq_len, window_size, global_tokens):
    i = jnp.arange(seq_len)[:, None]
    j = jnp.arange(seq_len)[None, :]
    keep = (j >= i - window_size) & (j <= i + window_size)
    if global_tokens > 0:
        keep = keep | (i < global_tokens) | (j < global_tokens)
    return keep.astype(jnp.float32)


def reference_forward(x, params, mask, num_heads):
    B, S, D = x.shape
    d_k = D // num_heads
    Q = x @ params["wq"] + params["bq"]
    K = x @ params["wk"] + params["bk"]
    V = x @ params["wv"] + params["bv"]
    Q = Q.reshape(B, S, num_heads, d_k).transpose(0, 2, 1, 3)
    K = K.reshape(B, S, num_heads, d_k).transpose(0, 2, 1, 3)
    V = V.reshape(B, S, num_heads, d_k).transpose(0, 2, 1, 3)
    scores = jnp.einsum("bhqd,bhkd->bhqk", Q, K) / math.sqrt(d_k)
    scores = jnp.where(mask[None, None] == 0.0, -jnp.inf, scores)
    probs = jax.nn.softmax(scores, axis=-1)
    out = jnp.einsum("bhqk,bhkd->bhqd", probs, V)
    out = out.transpose(0, 2, 1, 3).reshape(B, S, D)
    return out @ params["wo"] + params["bo"]


# ----------------------------------------------------------------------------
# Main
# ----------------------------------------------------------------------------
if __name__ == "__main__":
    # config: d_model=32, num_heads=4, window_size=2, global_tokens=1, dropout=0.0
    B, S, D = 2, 16, 32
    num_heads = 4
    d_k = D // num_heads
    window_size = 2
    global_tokens = 1

    key = jax.random.PRNGKey(0)
    k_x, k_q, k_k, k_v, k_o = jax.random.split(key, 5)

    # xavier_uniform with gain = 1/sqrt(d_k), fan_in = fan_out = D
    bound = (1.0 / math.sqrt(d_k)) * math.sqrt(6.0 / (D + D))

    def init_w(k):
        # stored as (D_in, D_out)  (PyTorch weight transposed)
        return jax.random.uniform(k, (D, D), jnp.float32, -bound, bound)

    params = {
        "wq": init_w(k_q), "bq": jnp.zeros((1, D), jnp.float32),
        "wk": init_w(k_k), "bk": jnp.zeros((1, D), jnp.float32),
        "wv": init_w(k_v), "bv": jnp.zeros((1, D), jnp.float32),
        "wo": init_w(k_o), "bo": jnp.zeros((1, D), jnp.float32),
    }

    x = jax.random.normal(k_x, (B, S, D), jnp.float32)

    out = sparse_mha_forward(x, params,
                             num_heads=num_heads,
                             window_size=window_size,
                             global_tokens=global_tokens)
    out = jax.block_until_ready(out)

    ref = reference_forward(
        x, params, build_local_window_mask(S, window_size, global_tokens), num_heads)

    assert out.shape == (B, S, D)
    # approx EUP reciprocal in the softmax -> tolerance relaxed from 1e-5.
    assert jnp.allclose(out, ref, atol=2e-3, rtol=2e-3), \
        f"max abs diff {jnp.max(jnp.abs(out - ref))}"

    print("KERNEL_OK")
</pallas_src>

<mosaic_0001>
module attributes {stable_mosaic.version = 11 : i64} {
  func.func @sparse_mha_kernel(%arg0: i32, %arg1: memref<1x16x32xf32, #tpu.memory_space<vmem>>, %arg2: memref<32x96xf32, #tpu.memory_space<vmem>>, %arg3: memref<1x96xf32, #tpu.memory_space<vmem>>, %arg4: memref<32x128xf32, #tpu.memory_space<vmem>>, %arg5: memref<1x128xf32, #tpu.memory_space<vmem>>, %arg6: memref<1x16x128xf32, #tpu.memory_space<vmem>>) attributes {dimension_semantics = [#tpu.dimension_semantics<parallel>], iteration_bounds = array<i64: 2>, scalar_prefetch = 0 : i64, scratch_operands = 0 : i64, tpu.core_type = #tpu.core_type<tc>, window_params = [{transform_indices = @transform_0, window_bounds = array<i64: 1, 16, 32>}, {pipeline_mode = #tpu.pipeline_mode<synchronous>, transform_indices = @transform_1, window_bounds = array<i64: 32, 96>}, {pipeline_mode = #tpu.pipeline_mode<synchronous>, transform_indices = @transform_2, window_bounds = array<i64: 1, 96>}, {pipeline_mode = #tpu.pipeline_mode<synchronous>, transform_indices = @transform_3, window_bounds = array<i64: 32, 128>}, {pipeline_mode = #tpu.pipeline_mode<synchronous>, transform_indices = @transform_4, window_bounds = array<i64: 1, 128>}, {transform_indices = @transform_5, window_bounds = array<i64: 1, 16, 128>}]} {
    %c0 = arith.constant 0 : index
    %c0_0 = arith.constant 0 : index
    %c0_1 = arith.constant 0 : index
    %0 = vector.load %arg1[%c0, %c0_0, %c0_1] : memref<1x16x32xf32, #tpu.memory_space<vmem>>, vector<1x16x32xf32>
    %1 = vector.shape_cast %0 : vector<1x16x32xf32> to vector<16x32xf32>
    %c0_2 = arith.constant 0 : index
    %c0_3 = arith.constant 0 : index
    %2 = vector.load %arg2[%c0_2, %c0_3] : memref<32x96xf32, #tpu.memory_space<vmem>>, vector<32x96xf32>
    %cst = arith.constant dense<0.000000e+00> : vector<16x96xf32>
    %3 = tpu.matmul %1, %2, %cst {dimension_numbers = #tpu.dot_dimension_numbers<[1], [0], [0], [1], [0, 0, 1, 1], [], []>} : vector<16x32xf32>, vector<32x96xf32>, vector<16x96xf32> -> vector<16x96xf32>
    %c0_4 = arith.constant 0 : index
    %c0_5 = arith.constant 0 : index
    %4 = vector.load %arg3[%c0_4, %c0_5] : memref<1x96xf32, #tpu.memory_space<vmem>>, vector<1x96xf32>
    %5 = vector.broadcast %4 : vector<1x96xf32> to vector<16x96xf32>
    %6 = arith.addf %3, %5 : vector<16x96xf32>
    %7 = vector.extract_strided_slice %6 {offsets = [0, 0], sizes = [16, 32], strides = [1, 1]} : vector<16x96xf32> to vector<16x32xf32>
    %8 = vector.extract_strided_slice %6 {offsets = [0, 32], sizes = [16, 32], strides = [1, 1]} : vector<16x96xf32> to vector<16x32xf32>
    %9 = vector.extract_strided_slice %6 {offsets = [0, 64], sizes = [16, 32], strides = [1, 1]} : vector<16x96xf32> to vector<16x32xf32>
    %10 = vector.shape_cast %7 : vector<16x32xf32> to vector<16x4x8xf32>
    %11 = tpu.transpose %10, [1, 0, 2] : vector<16x4x8xf32> -> vector<4x16x8xf32>
    %12 = vector.shape_cast %8 : vector<16x32xf32> to vector<16x4x8xf32>
    %13 = tpu.transpose %12, [1, 0, 2] : vector<16x4x8xf32> -> vector<4x16x8xf32>
    %14 = vector.shape_cast %9 : vector<16x32xf32> to vector<16x4x8xf32>
    %15 = tpu.transpose %14, [1, 0, 2] : vector<16x4x8xf32> -> vector<4x16x8xf32>
    "tpu.trace_start"() <{level = 10 : i32, message = "hqd,hkd->hqk"}> : () -> ()
    %cst_6 = arith.constant dense<0.000000e+00> : vector<4x16x16xf32>
    %16 = tpu.matmul %11, %13, %cst_6 {dimension_numbers = #tpu.dot_dimension_numbers<[2], [2], [1], [1], [0, 0, 0, 1, 1, 1], [0], [0]>} : vector<4x16x8xf32>, vector<4x16x8xf32>, vector<4x16x16xf32> -> vector<4x16x16xf32>
    "tpu.trace_stop"() : () -> ()
    %cst_7 = arith.constant 0.353553385 : f32
    %17 = vector.broadcast %cst_7 : f32 to vector<4x16x16xf32>
    %18 = arith.mulf %16, %17 : vector<4x16x16xf32>
    %19 = tpu.iota {dimensions = array<i32: 0>} : vector<16x16xi32>
    %20 = tpu.iota {dimensions = array<i32: 1>} : vector<16x16xi32>
    %c2_i32 = arith.constant 2 : i32
    %21 = vector.broadcast %c2_i32 : i32 to vector<16x16xi32>
    %22 = arith.subi %19, %21 : vector<16x16xi32>
    %23 = arith.cmpi sge, %20, %22 : vector<16x16xi32>
    %c2_i32_8 = arith.constant 2 : i32
    %24 = vector.broadcast %c2_i32_8 : i32 to vector<16x16xi32>
    %25 = arith.addi %19, %24 : vector<16x16xi32>
    %26 = arith.cmpi sle, %20, %25 : vector<16x16xi32>
    %27 = arith.andi %23, %26 : vector<16x16xi1>
    %c1_i32 = arith.constant 1 : i32
    %28 = vector.broadcast %c1_i32 : i32 to vector<16x16xi32>
    %29 = arith.cmpi slt, %19, %28 : vector<16x16xi32>
    %30 = arith.ori %27, %29 : vector<16x16xi1>
    %c1_i32_9 = arith.constant 1 : i32
    %31 = vector.broadcast %c1_i32_9 : i32 to vector<16x16xi32>
    %32 = arith.cmpi slt, %20, %31 : vector<16x16xi32>
    %33 = arith.ori %30, %32 : vector<16x16xi1>
    %34 = vector.shape_cast %33 : vector<16x16xi1> to vector<1x16x16xi1>
    %cst_10 = arith.constant 0xFF800000 : f32
    %35 = vector.shape_cast %34 : vector<1x16x16xi1> to vector<1x16x16xi1>
    %36 = vector.broadcast %35 : vector<1x16x16xi1> to vector<4x16x16xi1>
    %37 = vector.broadcast %cst_10 : f32 to vector<4x16x16xf32>
    %38 = arith.select %36, %18, %37 : vector<4x16x16xi1>, vector<4x16x16xf32>
    %cst_11 = arith.constant dense<0xFF800000> : vector<4x16xf32>
    %39 = vector.multi_reduction <maximumf>, %38, %cst_11 [2] : vector<4x16x16xf32> to vector<4x16xf32>
    %40 = vector.shape_cast %39 : vector<4x16xf32> to vector<4x16x1xf32>
    %41 = vector.broadcast %40 : vector<4x16x1xf32> to vector<4x16x16xf32>
    %42 = arith.subf %38, %41 : vector<4x16x16xf32>
    %43 = math.exp %42 : vector<4x16x16xf32>
    %cst_12 = arith.constant dense<0.000000e+00> : vector<4x16xf32>
    %44 = vector.multi_reduction <add>, %43, %cst_12 [2] : vector<4x16x16xf32> to vector<4x16xf32>
    %45 = vector.shape_cast %44 : vector<4x16xf32> to vector<4x16x1xf32>
    %46 = tpu.reciprocal %45 {approx = true} : vector<4x16x1xf32> -> vector<4x16x1xf32>
    %47 = vector.broadcast %46 : vector<4x16x1xf32> to vector<4x16x16xf32>
    %48 = arith.mulf %43, %47 : vector<4x16x16xf32>
    "tpu.trace_start"() <{level = 10 : i32, message = "hqk,hkd->hqd"}> : () -> ()
    %cst_13 = arith.constant dense<0.000000e+00> : vector<4x16x8xf32>
    %49 = tpu.matmul %48, %15, %cst_13 {dimension_numbers = #tpu.dot_dimension_numbers<[2], [1], [1], [2], [0, 0, 0, 1, 1, 2], [0], [0]>} : vector<4x16x16xf32>, vector<4x16x8xf32>, vector<4x16x8xf32> -> vector<4x16x8xf32>
    "tpu.trace_stop"() : () -> ()
    %50 = tpu.transpose %49, [1, 0, 2] : vector<4x16x8xf32> -> vector<16x4x8xf32>
    %51 = vector.shape_cast %50 : vector<16x4x8xf32> to vector<16x32xf32>
    %c0_14 = arith.constant 0 : index
    %c0_15 = arith.constant 0 : index
    %52 = vector.load %arg4[%c0_14, %c0_15] : memref<32x128xf32, #tpu.memory_space<vmem>>, vector<32x128xf32>
    %cst_16 = arith.constant dense<0.000000e+00> : vector<16x128xf32>
    %53 = tpu.matmul %51, %52, %cst_16 {dimension_numbers = #tpu.dot_dimension_numbers<[1], [0], [0], [1], [0, 0, 1, 1], [], []>} : vector<16x32xf32>, vector<32x128xf32>, vector<16x128xf32> -> vector<16x128xf32>
    %c0_17 = arith.constant 0 : index
    %c0_18 = arith.constant 0 : index
    %54 = vector.load %arg5[%c0_17, %c0_18] : memref<1x128xf32, #tpu.memory_space<vmem>>, vector<1x128xf32>
    %55 = vector.broadcast %54 : vector<1x128xf32> to vector<16x128xf32>
    %56 = arith.addf %53, %55 : vector<16x128xf32>
    %c0_19 = arith.constant 0 : index
    %c0_20 = arith.constant 0 : index
    %c0_21 = arith.constant 0 : index
    %57 = vector.load %arg6[%c0_19, %c0_20, %c0_21] : memref<1x16x128xf32, #tpu.memory_space<vmem>>, vector<1x16x128xf32>
    %58 = vector.shape_cast %57 : vector<1x16x128xf32> to vector<16x128xf32>
    %59 = vector.shape_cast %56 : vector<16x128xf32> to vector<1x16x128xf32>
    tpu.vector_store %arg6[%c0_19, %c0_20, %c0_21], %59 {strides = array<i32>} : memref<1x16x128xf32, #tpu.memory_space<vmem>>, vector<1x16x128xf32>,
    return
  }
  func.func @transform_0(%arg0: i32) -> (i32, i32, i32) {
    %c0_i32 = arith.constant 0 : i32
    %c0_i32_0 = arith.constant 0 : i32
    %c0_i32_1 = arith.constant 0 : i32
    return %arg0, %c0_i32, %c0_i32_0 : i32, i32, i32
  }
  func.func @transform_1(%arg0: i32) -> (i32, i32) {
    %c0_i32 = arith.constant 0 : i32
    %c0_i32_0 = arith.constant 0 : i32
    %c0_i32_1 = arith.constant 0 : i32
    return %c0_i32, %c0_i32_0 : i32, i32
  }
  func.func @transform_2(%arg0: i32) -> (i32, i32) {
    %c0_i32 = arith.constant 0 : i32
    %c0_i32_0 = arith.constant 0 : i32
    %c0_i32_1 = arith.constant 0 : i32
    return %c0_i32, %c0_i32_0 : i32, i32
  }
  func.func @transform_3(%arg0: i32) -> (i32, i32) {
    %c0_i32 = arith.constant 0 : i32
    %c0_i32_0 = arith.constant 0 : i32
    %c0_i32_1 = arith.constant 0 : i32
    return %c0_i32, %c0_i32_0 : i32, i32
  }
  func.func @transform_4(%arg0: i32) -> (i32, i32) {
    %c0_i32 = arith.constant 0 : i32
    %c0_i32_0 = arith.constant 0 : i32
    %c0_i32_1 = arith.constant 0 : i32
    return %c0_i32, %c0_i32_0 : i32, i32
  }
  func.func @transform_5(%arg0: i32) -> (i32, i32, i32) {
    %c0_i32 = arith.constant 0 : i32
    %c0_i32_0 = arith.constant 0 : i32
    %c0_i32_1 = arith.constant 0 : i32
    return %arg0, %c0_i32, %c0_i32_0 : i32, i32, i32
  }
}

</mosaic_0001>

<bundles_post_ra>
// kernel: tpu_custom_call.1
= control target key start
LH: loop header
LB: loop body
LE: loop exit
PB: predicated region body
PF: predicated region fallthrough
CT: control target
= control target key end

     0   :  { %10 = vsyncpa [#allocation3], 0  ;;  %s3776_s0 = inlined_call_operand.hbm [shape: f32[2,16,32], index: 0, kind: input, shape index: {}]   ;;  %s3777_s1 = inlined_call_operand.hbm [shape: f32[32,96], index: 1, kind: input, shape index: {}]   ;;  %s3778_s2 = inlined_call_operand.vmem [shape: f32[1,96], index: 2, kind: input, shape index: {}]   ;;  %s3779_s3 = inlined_call_operand.hbm [shape: f32[32,128], index: 3, kind: input, shape index: {}]   ;;  %s3780_s4 = inlined_call_operand.vmem [shape: f32[1,128], index: 4, kind: input, shape index: {}]   ;;  %s3781_s5 = inlined_call_operand.hbm [shape: f32[2,16,128], index: 5, kind: output, shape index: {}]  }
   0x1   :  { %12 = vsyncpa [#allocation3 + $0x1], 0 }
   0x2   :  { %13 = vsyncpa [#allocation6], 0 }
   0x3   :  { %14 = vsyncpa [#allocation4], 0 }
   0x4   :  { %16 = vsyncpa [#allocation4 + $0x1], 0  ;;  %s3121_s18 = smov 0   ;;  %s3123_s19 = smov 0  }
   0x5   :  { %s3125_s20 = smov 0   ;;  %s3127_s21 = smov 0  }
   0x6 LB: > { %s3142_s22 = sadd.s32 4294967295, %s3072_s21   ;;  %s2558_s23 = sadd.s32 4294967294, %s3072_s21   ;;  %s3072_s21 = sphi %s3127_s21, %s3807_s21   ;;  %s3068_s20 = sphi %s3125_s20, %s3806_s20   ;;  %s3064_s19 = sphi %s3123_s19, %s3805_s19   ;;  %s3060_s18 = sphi %s3121_s18, %s3804_s18  }
   0x7   : > { %p42_p0 = scmp.ne.s32.totalorder %s3064_s19, %s3060_s18  ;;  %p3782_p1 = scmp.eq.s32.totalorder %s3142_s22, 0 }
   0x8   : > { %p156_p3 = scmp.eq.s32.totalorder %s2558_s23, 1  ;;  %p2559_p5 = scmp.ge.s32.totalorder %s3072_s21, 1 }
   0x9   : > { %p3151_p4 = por %p3782_p1, %p42_p0  ;;  %p163_p7 = scmp.lt.s32.totalorder %s3072_s21, 3 }
   0xa   : > { %p3156_p6 = por %p156_p3, %p42_p0  ;;  %s3074_s27 = smov [#allocation5]  }
   0xb   : > { %s3785_s24 = scalar_select %p3151_p4, 1, 0 }
   0xc   : > { %s3786_s25 = scalar_select %p3156_p6, 1, 0 }
   0xd   : > { %p3161_p8 = pnand %p2559_p5, %p163_p7  ;;  %s175_s28 = sshll.u32 %s3074_s27, 4  ;;  %s3165_s28 = int_to_ptr.vmem [resolvable:$true] %s175_s28 }
   0xe   : > { %s3075_s30 = smov [#allocation7]   ;;  %s2916_s9 = scalar_lea.hbm %s3777_s1, 512 }
   0xf   : > { %p2816_p9 = pneg %p3161_p8  ;;  %s191_s6 = sshll.u32 %s3075_s30, 4  ;;  %s3176_s6 = int_to_ptr.vmem [resolvable:$true] %s191_s6 }
  0x10   : > { %p2917_p12 = scmp.ne.s32.totalorder %s3777_s1, %s2916_s9  ;;  %p2923_p5 = scmp.lt.u32.totalorder %s2916_s9, %s3777_s1 }
  0x11   : > { %p3172_p11 = pnand %p2816_p9, %p3782_p1 }
  0x13   : > { %p2918_p13 = pneg %p3172_p11 }
  0x15   : > { %p2919_p0 = pnand %p2918_p13, %p2917_p12 }
  0x17   : > { %p2920_p3 = pneg %p2919_p0 }
  0x19   : > { %p2925_p7 = pnand %p2923_p5, %p2920_p3 }
  0x1b   : > { %2928 = shalt.err (!%p2925_p7)
}
  0x1c   : > { %s2929_s14 = scalar_lea.vmem %s3165_s28, 512  ;;  %p2937_p2 = scmp.lt.s32.totalorder %s3165_s28, %s3165_s28 }
  0x1d   : > { %p2930_p9 = scmp.ne.s32.totalorder %s3165_s28, %s2929_s14  ;;  %p2938_p12 = scmp.lt.s32.totalorder %s2929_s14, %s2929_s14 }
  0x1f   : > { %p2932_p10 = pnand %p2930_p9, %p2918_p13  ;;  %p2939_p0 = por %p2938_p12, %p2937_p2 }
  0x21   : > { %p2933_p1 = pneg %p2932_p10 }
  0x23   : > { %p2940_p6 = pnand %p2939_p0, %p2933_p1 }
  0x25   : > { %2943 = shalt.err (!%p2940_p6)
}
  0x26   : > { %s3076_s15 = smov 128   ;;  %s3077_s16 = smov 8  }
  0x27   : > { %2819 = dma.hbm_to_vmem [thread:$0]  (!%p3172_p11), %s3777_s1, 512, %s3165_s28, [#allocation6], %s3076_s15, %s3076_s15, %s3077_s16  }
  0x28   : > { %s2944_s7 = scalar_lea.hbm %s3779_s3, 512 }
  0x29   : > { %p2945_p1 = scmp.ne.s32.totalorder %s3779_s3, %s2944_s7  ;;  %p2951_p10 = scmp.lt.u32.totalorder %s2944_s7, %s3779_s3 }
  0x2b   : > { %p2947_p2 = pnand %p2945_p1, %p2918_p13 }
  0x2d   : > { %p2948_p6 = pneg %p2947_p2 }
  0x2f   : > { %p2953_p3 = pnand %p2951_p10, %p2948_p6 }
  0x31   : > { %2956 = shalt.err (!%p2953_p3)
}
  0x32   : > { %s2957_s28 = scalar_lea.vmem %s3176_s6, 512  ;;  %p2965_p12 = scmp.lt.s32.totalorder %s3176_s6, %s3176_s6 }
  0x33   : > { %p2958_p5 = scmp.ne.s32.totalorder %s3176_s6, %s2957_s28  ;;  %p2966_p0 = scmp.lt.s32.totalorder %s2957_s28, %s2957_s28 }
  0x35   : > { %p2960_p7 = pnand %p2958_p5, %p2918_p13  ;;  %p2967_p1 = por %p2966_p0, %p2965_p12 }
  0x37   : > { %p2961_p9 = pneg %p2960_p7 }
  0x39   : > { %p2968_p2 = pnand %p2967_p1, %p2961_p9 }
  0x3b   : > { %2971 = shalt.err (!%p2968_p2)
}
  0x3c   : > { %2822 = dma.hbm_to_vmem [thread:$0]  (!%p3172_p11), %s3779_s3, 512, %s3176_s6, [#allocation6], %s3076_s15, %s3076_s15, %s3077_s16  }
  0x3d   : > { %s3237_s29 = sadd.s32 1, %s3072_s21   ;;  %s29_s14 = sadd.s32 1, %s3068_s20 }
  0x3e   : > { %s26_s17 = ssub.s32 %s3072_s21, %s3237_s29  ;;  %p36_p13 = scmp.ne.s32.totalorder %s3068_s20, %s3064_s19 }
  0x3f   : > { %p27_p6 = scmp.eq.s32.totalorder %s26_s17, 0  ;;  %p37_p10 = scmp.eq.s32.totalorder %s3072_s21, 0 }
  0x40   : > { %p3789_p3 = scmp.eq.s32.totalorder %s3142_s22, 1  ;;  %p2833_p7 = scmp.lt.s32.totalorder %s3072_s21, 2 }
  0x41   : > { %s3253_s27 = scalar_select %p27_p6, %s3068_s20, %s29_s14  }
  0x42   : > { %p3247_p5 = por %p3789_p3, %p36_p13  ;;  %p38_p9 = por %p37_p10, %p36_p13 }
  0x43   : > { %s208_s30 = sand.u32 1, %s3068_s20   ;;  %s2624_s6 = sshll.u32 %s3072_s21, 8 }
  0x44   : > { %s3790_s23 = scalar_select %p3247_p5, 1, 0 }
  0x45   : > { %s2563_s7 = sshll.u32 %s208_s30, 4  ;;  %s3260_s10 = scalar_lea.hbm %s3776_s0, %s2624_s6 }
  0x46   : > { %s212_s11 = scalar_lea.vmem [#allocation2], %s2563_s7  ;;  %p3264_p11 = pnand %p2833_p7, %p38_p9 }
  0x47   : > { %s219_s28 = sshll.u32 %s212_s11, 4  ;;  %s3268_s13 = scalar_lea.sflag [#allocation3], %s208_s30  ;;  %s3262_s28 = int_to_ptr.vmem [resolvable:$true] %s219_s28 }
  0x48   : > { %s2972_s14 = scalar_lea.hbm %s3260_s10, 256  ;;  %p2974_p0 = pneg %p3264_p11 }
  0x49   : > { %p2973_p12 = scmp.ne.s32.totalorder %s3260_s10, %s2972_s14  ;;  %s2977_s6 = scalar_lea.hbm %s3776_s0, 512 }
  0x4a   : > { %p2978_p13 = scmp.lt.u32.totalorder %s3260_s10, %s3776_s0  ;;  %p2979_p6 = scmp.lt.u32.totalorder %s2977_s6, %s2972_s14 }
  0x4b   : > { %p2975_p1 = pnand %p2974_p0, %p2973_p12  ;;  %p2981_p3 = scmp.lt.u32.totalorder %s2972_s14, %s3260_s10 }
  0x4c   : > { %p2980_p10 = por %p2979_p6, %p2978_p13 }
  0x4d   : > { %p2976_p2 = pneg %p2975_p1 }
  0x4e   : > { %p2982_p7 = por %p2981_p3, %p2980_p10 }
  0x50   : > { %p2983_p9 = pnand %p2982_p7, %p2976_p2 }
  0x52   : > { %2986 = shalt.err (!%p2983_p9)
}
  0x53   : > { %s2987_s30 = scalar_lea.vmem %s3262_s28, 256  ;;  %s3078_s11 = smov [#allocation2]  }
  0x54   : > { %p2988_p12 = scmp.ne.s32.totalorder %s3262_s28, %s2987_s30  ;;  %s2992_s17 = sshll.u32 %s3078_s11, 4  ;;  %s2993_s17 = int_to_ptr.vmem [resolvable:$false] %s2992_s17 }
  0x55   : > { %s2994_s7 = scalar_lea.vmem %s2993_s17, 512  ;;  %p2995_p4 = scmp.lt.s32.totalorder %s3262_s28, %s2993_s17 }
  0x56   : > { %p2990_p1 = pnand %p2988_p12, %p2974_p0  ;;  %p2996_p13 = scmp.lt.s32.totalorder %s2994_s7, %s2987_s30 }
  0x58   : > { %p2991_p5 = pneg %p2990_p1  ;;  %p2997_p6 = por %p2996_p13, %p2995_p4 }
  0x5a   : > { %p2998_p10 = pnand %p2997_p6, %p2991_p5 }
  0x5c   : > { %3001 = shalt.err (!%p2998_p10)
}
  0x5d   : > { %2826 = dma.hbm_to_vmem [thread:$0]  (!%p3264_p11), %s3260_s10, 256, %s3262_s28, %s3268_s13, %s3076_s15, %s3076_s15, %s3077_s16  }
  0x5e   : > { %231 = sbr.rel (%p3161_p8) target bundleno = 1787 (0x6fb), region = 40  ;;  %s3302_s14 = sand.u32 (!%p3161_p8), 1, %s3064_s19  }
  0x5f   : > { %s2567_s6 = sshll.u32 (!%p3161_p8), %s3302_s14, 4  ;;  %s234_s8 = scalar_lea.sflag (!%p3161_p8), [#allocation3], %s3302_s14 }
  0x60   : > { %s237_s12 = scalar_lea.vmem (!%p3161_p8), [#allocation2], %s2567_s6  ;;  %p3792_p4 = scmp.ne.s32.totalorder (!%p3161_p8), %s3785_s24, 0 }
  0x65   : > { %3047 = dma.done.wait (%p3792_p4), %s234_s8, 256  }
  0x66   : > { %3049 = vsyncadd (%p3792_p4), %s234_s8, 4294967040  ;;  %p3793_p5 = scmp.eq.s32.totalorder %s3142_s22, 0 }
  0x68   : > { %3051 = dma.done.wait (%p3793_p5), [#allocation6], 1024   ;;  %p3794_p8 = pmov %p3793_p5 }
  0x69   : > { %vm285_vm0 = vcmask 261120   ;;  %v274_v0 = vld [vmem:[#allocation5] sm:$0xff]  ;;  %v275_v1 = vld [vmem:[#allocation5 + $0x8] sm:$0xff]  ;;  %v276_v2 = vld [vmem:[#allocation5 + $0x10] sm:$0xff]  ;;  %s3079_s15 = smov 112   ;;  %s3080_s16 = smov 120   ;;  %v392_v17 = vlaneseq }
  0x6a   : > { %3053 = vsyncadd (%p3794_p8), [#allocation6], 4294966272  ;;  %v2748_v3 = vpack.c.bf16 %v275_v1, %v274_v0  ;;  %v277_v4 = vld [vmem:[#allocation5 + $0x18] sm:$0xff]  ;;  %v272_v5 = vld [vmem:[%s237_s12] sm:$0xff]  ;;  %s3081_s10 = smov 104   ;;  %s3082_s28 = smov 96  }
  0x6b   : > { %v2752_v6 = vpack.c.bf16 %v277_v4, %v276_v2  ;;  %2678 = vmatprep.mubr.msk.f32.mxu0 %vm285_vm0, %v272_v5  ;;  %v273_v7 = vld [vmem:[%s237_s12 + $0x8] sm:$0xff]  ;;  %v2571_v8 = vld [vmem:[%s3778_s2] ss:$0 sm:$0xff]  ;;  %v3083_v15 = vmov 1983009808   ;;  %v3346_v23 = vshrl.u32 %v392_v17, 7 }
  0x6c   : > { %2749 = vmatprep.subr.bf16.mxu0 %v2748_v3  ;;  %v390_v16 = vunpack.c.l.s4 %v3083_v15  ;;  %v3084_v20 = vmov 1934713408   ;;  %vm1251_vm1 = vcmask 64512   ;;  %vm1642_vm13 = vcmask 130048   ;;  %s3085_s13 = smov 64   ;;  %s3086_s9 = smov 16  }
  0x6d   : > { %2751 = vmatpush3.bf16.msra.mxu0 %v2748_v3  ;;  %v422_v21 = vunpack.c.l.s4 %v3084_v20  ;;  %vm3456_vm2 = vmpackc.low %vm1251_vm1, %vm1251_vm1  ;;  %vm1623_vm8 = vcmp.lt.s32.totalorder %v3346_v23, 1  ;;  %s3087_s30 = smov 8   ;;  %s3088_s11 = smov 24   ;;  %vm2355_vm15 = vcmask 195584  }
  0x6e   : > { %2753 = vmatprep.subr.bf16.mxu0 %v2752_v6  ;;  %v391_v22 = vunpack.c.0.s8 %v390_v16  ;;  %s271_s8 = scalar_lea.vmem [#allocation8], %s2567_s6  ;;  %s2625_s24 = sshll.u32 %s3142_s22, 8 }
  0x6f   : > { %v423_v26 = vunpack.c.0.s8 %v422_v21  ;;  %s2466_s12 = sshll.u32 %s271_s8, 4  ;;  %p3801_p0 = scmp.ne.s32.totalorder %s3790_s23, 0  ;;  %s3726_s12 = int_to_ptr.vmem [resolvable:$true] %s2466_s12 }
  0x70   : > { %v3361_v29 = vsub.s32 %v391_v22, %v3346_v23  ;;  %s3002_s6 = scalar_lea.vmem %s3726_s12, 256  ;;  %s3089_s22 = smov [#allocation8]  }
  0x71   : > { %2755 = vmatpush3.bf16.msra.mxu0 %v2752_v6  ;;  %v3376_v36 = vsub.s32 %v423_v26, %v3346_v23  ;;  %p3003_p11 = scmp.ne.s32.totalorder %s3726_s12, %s3002_s6 }
  0x73   : > { %p3004_p2 = pnand %p3003_p11, %p3801_p0 }
  0x74   : > { %2679 = vmatmul.mubr.msk.f32.vlgmr.msra.gmra.mrb[0].mxu0 %vm285_vm0, %v273_v7 }
  0x75   : > { %p3005_p3 = pneg %p3004_p2 }
 0x147   : > { %v2680_v9 = vpop.f32.mrb[0].mxu0 }
 0x148   : > { %v3321_v10 = vadd.f32 %v2680_v9, %v2571_v8  ;;  %v358_v11 = vpop.f32.mrb[1].mxu0 }
 0x149   : > { %v3325_v12 = vadd.f32 %v2571_v8, %v358_v11 }
 0x14a   : > { %377 = vrot.lane.b32.xlu1 %v3321_v10, %s3079_s15  ;;  %371 = vrot.lane.b32.xlu0 %v3321_v10, %s3080_s16 }
 0x14e   : > { %375 = vrot.lane.b32.xlu1 %v3325_v12, %s3079_s15  ;;  %369 = vrot.lane.b32.xlu0 %v3325_v12, %s3080_s16  ;;  %s3731_s16 = scalar_lea.hbm %s3781_s5, %s2625_s24 }
 0x152   : > { %383 = vrot.lane.b32.xlu1 %v3321_v10, %s3081_s10  ;;  %381 = vrot.lane.b32.xlu0 %v3325_v12, %s3081_s10  ;;  %s2453_s10 = scalar_lea.sflag [#allocation4], %s3302_s14 }
 0x156   : > { %661 = vrot.lane.b32.xlu1 %v3321_v10, %s3082_s28  ;;  %659 = vrot.lane.b32.xlu0 %v3325_v12, %s3082_s28 }
 0x1bc   : > { %v3335_v13 = vpop.permute.xlu1 %377  ;;  %v3337_v14 = vpop.permute.xlu0 %371 }
 0x1bd   : > { %665 = vrot.lane.b32.xlu1 %v3337_v14, %s3082_s28  ;;  %v455_v5 = vcombine.low %v3321_v10, %v3335_v13  ;;  %v456_v7 = vcombine.high %v3321_v10, %v3335_v13 }
 0x1bf   : > { %v463_v15 = vrot.slane %v455_v5, %v3361_v29  ;;  %v470_v22 = vrot.slane %v456_v7, %v3361_v29 }
 0x1c0   : > { %v3341_v18 = vpop.permute.xlu1 %375  ;;  %v3343_v19 = vpop.permute.xlu0 %369 }
 0x1c1   : > { %669 = vrot.lane.b32.xlu1 %v3335_v13, %s3082_s28  ;;  %663 = vrot.lane.b32.xlu0 %v3343_v19, %s3082_s28  ;;  %v387_v24 = vcombine.low %v3325_v12, %v3341_v18  ;;  %v388_v25 = vcombine.high %v3325_v12, %v3341_v18 }
 0x1c3   : > { %v395_v34 = vrot.slane %v387_v24, %v3361_v29  ;;  %v402_v35 = vrot.slane %v388_v25, %v3361_v29 }
 0x1c4   : > { %v3356_v27 = vpop.permute.xlu1 %383  ;;  %v3358_v28 = vpop.permute.xlu0 %381 }
 0x1c5   : > { %v403_v30 = vcombine.low %v3343_v19, %v3358_v28  ;;  %v404_v31 = vcombine.high %v3343_v19, %v3358_v28  ;;  %673 = vrot.lane.b32.xlu1 %v3356_v27, %s3082_s28  ;;  %667 = vrot.lane.b32.xlu0 %v3341_v18, %s3082_s28  ;;  %v471_v2 = vcombine.low %v3337_v14, %v3356_v27 }
 0x1c6   : > { %v472_v6 = vcombine.high %v3337_v14, %v3356_v27 }
 0x1c7   : > { %v411_v32 = vrot.slane %v403_v30, %v3361_v29  ;;  %v418_v33 = vrot.slane %v404_v31, %v3361_v29  ;;  %v479_v8 = vrot.slane %v471_v2, %v3361_v29 }
 0x1c8   : > { %v662_v1 = vpop.permute.xlu1 %661  ;;  %v660_v3 = vpop.permute.xlu0 %659  ;;  %v486_v16 = vrot.slane %v472_v6, %v3361_v29 }
 0x1c9   : > { %v419_v37 = vcombine.low %v395_v34, %v411_v32  ;;  %v420_v38 = vcombine.high %v395_v34, %v411_v32  ;;  %v435_v39 = vcombine.low %v402_v35, %v418_v33  ;;  %v436_v40 = vcombine.high %v402_v35, %v418_v33  ;;  %671 = vrot.lane.b32.xlu0 %v3358_v28, %s3082_s28  ;;  %s3006_s28 = sshll.u32 %s3089_s22, 4  ;;  %s3007_s28 = int_to_ptr.vmem [resolvable:$false] %s3006_s28 }
 0x1ca   : > { %v487_v24 = vcombine.low %v463_v15, %v479_v8  ;;  %v488_v25 = vcombine.high %v463_v15, %v479_v8  ;;  %v503_v33 = vcombine.low %v470_v22, %v486_v16  ;;  %v504_v34 = vcombine.high %v470_v22, %v486_v16  ;;  %p3009_p7 = scmp.lt.s32.totalorder %s3726_s12, %s3007_s28 }
 0x1cb   : > { %v427_v41 = vrot.slane %v419_v37, %v3376_v36  ;;  %v434_v42 = vrot.slane %v420_v38, %v3376_v36  ;;  %v443_v43 = vrot.slane %v435_v39, %v3376_v36  ;;  %v450_v44 = vrot.slane %v436_v40, %v3376_v36 }
 0x1cc   : > { %v495_v40 = vrot.slane %v487_v24, %v3376_v36 }
 0x1cd   : > { %v523_v45 = vcombine.low %v427_v41, %v434_v42  ;;  %v2574_v46 = vcombine.high %v427_v41, %v434_v42  ;;  %v539_v47 = vcombine.low %v443_v43, %v450_v44  ;;  %v2575_v48 = vcombine.high %v443_v43, %v450_v44 }
 0x1ce   : > { %v502_v41 = vrot.slane %v488_v25, %v3376_v36 }
 0x1cf   : > { %v530_v49 = vrot.slane %v523_v45, %v3361_v29  ;;  %v538_v50 = vrot.slane %v2574_v46, %v3361_v29  ;;  %v546_v51 = vrot.slane %v539_v47, %v3361_v29  ;;  %v554_v52 = vrot.slane %v2575_v48, %v3361_v29 }
 0x1d0   : > { %v591_v25 = vcombine.low %v495_v40, %v502_v41 }
 0x1d1   : > { %v555_v53 = vcombine.low %v530_v49, %v538_v50  ;;  %v556_v54 = vcombine.high %v530_v49, %v538_v50  ;;  %v571_v55 = vcombine.low %v546_v51, %v554_v52  ;;  %v572_v56 = vcombine.high %v546_v51, %v554_v52 }
 0x1d2   : > { %v511_v49 = vrot.slane %v503_v33, %v3376_v36  ;;  %v518_v50 = vrot.slane %v504_v34, %v3376_v36 }
 0x1d3   : > { %v563_v57 = vrot.slane %v555_v53, %v3376_v36  ;;  %v579_v58 = vrot.slane %v571_v55, %v3376_v36  ;;  %v3391_v59 = vrot.slane %v556_v54, %v3376_v36  ;;  %v3394_v60 = vrot.slane %v572_v56, %v3376_v36 }
 0x1d5   : > { %v587_v61 = vcombine.low %v563_v57, %v579_v58  ;;  %v588_v62 = vcombine.high %v563_v57, %v579_v58  ;;  %v589_v63 = vcombine.low %v3391_v59, %v3394_v60  ;;  %v590_v0 = vcombine.high %v3391_v59, %v3394_v60 }
 0x1d6   : > { %v1617_v59 = vadd.s32 2, %v3346_v23 }
 0x1d7   : > { %2685 = vmatprep.mubr.msk.f32.mxu1 %vm1251_vm1, %v587_v61  ;;  %2692 = vmatprep.mubr.msk.f32.mxu0 %vm1251_vm1, %v588_v62 }
 0x22f   : > { %v666_v4 = vpop.permute.xlu1 %665 }
 0x233   : > { %v670_v9 = vpop.permute.xlu1 %669  ;;  %v664_v11 = vpop.permute.xlu0 %663 }
 0x234   : > { %v751_v20 = vcombine.low %v662_v1, %v670_v9  ;;  %v752_v21 = vcombine.high %v662_v1, %v670_v9 }
 0x236   : > { %v759_v35 = vrot.slane %v751_v20, %v3361_v29  ;;  %v766_v37 = vrot.slane %v752_v21, %v3361_v29 }
 0x237   : > { %v674_v26 = vpop.permute.xlu1 %673  ;;  %v668_v32 = vpop.permute.xlu0 %667 }
 0x238   : > { %v767_v30 = vcombine.low %v666_v4, %v674_v26  ;;  %v768_v31 = vcombine.high %v666_v4, %v674_v26  ;;  %v683_v42 = vcombine.low %v660_v3, %v668_v32  ;;  %v684_v43 = vcombine.high %v660_v3, %v668_v32 }
 0x239   : > { %v2576_v26 = vcombine.high %v495_v40, %v502_v41 }
 0x23a   : > { %v775_v38 = vrot.slane %v767_v30, %v3361_v29  ;;  %v782_v39 = vrot.slane %v768_v31, %v3361_v29  ;;  %v691_v57 = vrot.slane %v683_v42, %v3361_v29  ;;  %v698_v58 = vrot.slane %v684_v43, %v3361_v29 }
 0x23b   : > { %v672_v48 = vpop.permute.xlu0 %671 }
 0x23c   : > { %v783_v44 = vcombine.low %v759_v35, %v775_v38  ;;  %v784_v45 = vcombine.high %v759_v35, %v775_v38  ;;  %v799_v46 = vcombine.low %v766_v37, %v782_v39  ;;  %v800_v47 = vcombine.high %v766_v37, %v782_v39 }
 0x23d   : > { %v699_v51 = vcombine.low %v664_v11, %v672_v48  ;;  %v700_v52 = vcombine.high %v664_v11, %v672_v48  ;;  %v607_v37 = vcombine.low %v511_v49, %v518_v50  ;;  %v2577_v38 = vcombine.high %v511_v49, %v518_v50 }
 0x23e   : > { %v791_v53 = vrot.slane %v783_v44, %v3376_v36  ;;  %v798_v54 = vrot.slane %v784_v45, %v3376_v36  ;;  %v807_v55 = vrot.slane %v799_v46, %v3376_v36  ;;  %v814_v56 = vrot.slane %v800_v47, %v3376_v36 }
 0x23f   : > { %v707_v61 = vrot.slane %v699_v51, %v3361_v29  ;;  %v714_v62 = vrot.slane %v700_v52, %v3361_v29  ;;  %v598_v47 = vrot.slane %v591_v25, %v3361_v29  ;;  %v606_v48 = vrot.slane %v2576_v26, %v3361_v29 }
 0x240   : > { %v887_v1 = vcombine.low %v791_v53, %v798_v54  ;;  %v2580_v2 = vcombine.high %v791_v53, %v798_v54  ;;  %v903_v3 = vcombine.low %v807_v55, %v814_v56  ;;  %v2581_v4 = vcombine.high %v807_v55, %v814_v56 }
 0x241   : > { %v715_v5 = vcombine.low %v691_v57, %v707_v61  ;;  %v716_v6 = vcombine.high %v691_v57, %v707_v61  ;;  %v731_v7 = vcombine.low %v698_v58, %v714_v62  ;;  %v732_v8 = vcombine.high %v698_v58, %v714_v62 }
 0x242   : > { %v894_v9 = vrot.slane %v887_v1, %v3361_v29  ;;  %v902_v11 = vrot.slane %v2580_v2, %v3361_v29  ;;  %v910_v15 = vrot.slane %v903_v3, %v3361_v29  ;;  %v918_v16 = vrot.slane %v2581_v4, %v3361_v29 }
 0x243   : > { %v723_v20 = vrot.slane %v715_v5, %v3376_v36  ;;  %v730_v21 = vrot.slane %v716_v6, %v3376_v36  ;;  %v739_v22 = vrot.slane %v731_v7, %v3376_v36  ;;  %v746_v24 = vrot.slane %v732_v8, %v3376_v36 }
 0x244   : > { %v919_v30 = vcombine.low %v894_v9, %v902_v11  ;;  %v935_v31 = vcombine.low %v910_v15, %v918_v16  ;;  %v920_v39 = vcombine.high %v894_v9, %v902_v11  ;;  %v936_v42 = vcombine.high %v910_v15, %v918_v16 }
 0x245   : > { %v819_v32 = vcombine.low %v723_v20, %v730_v21  ;;  %v2578_v33 = vcombine.high %v723_v20, %v730_v21  ;;  %v835_v34 = vcombine.low %v739_v22, %v746_v24  ;;  %v2579_v35 = vcombine.high %v739_v22, %v746_v24 }
 0x246   : > { %v927_v40 = vrot.slane %v919_v30, %v3376_v36  ;;  %v943_v41 = vrot.slane %v935_v31, %v3376_v36  ;;  %v934_v53 = vrot.slane %v920_v39, %v3376_v36  ;;  %v950_v54 = vrot.slane %v936_v42, %v3376_v36 }
 0x247   : > { %v826_v43 = vrot.slane %v819_v32, %v3361_v29  ;;  %v834_v44 = vrot.slane %v2578_v33, %v3361_v29  ;;  %v842_v45 = vrot.slane %v835_v34, %v3361_v29  ;;  %v850_v46 = vrot.slane %v2579_v35, %v3361_v29 }
 0x248   : > { %v614_v55 = vrot.slane %v607_v37, %v3361_v29  ;;  %v622_v56 = vrot.slane %v2577_v38, %v3361_v29  ;;  %v951_v1 = vcombine.low %v927_v40, %v943_v41  ;;  %v952_v2 = vcombine.high %v927_v40, %v943_v41 }
 0x249   : > { %v851_v51 = vcombine.low %v826_v43, %v834_v44  ;;  %v852_v49 = vcombine.high %v826_v43, %v834_v44  ;;  %v867_v50 = vcombine.low %v842_v45, %v850_v46  ;;  %v868_v52 = vcombine.high %v842_v45, %v850_v46 }
 0x24a   : > { %v623_v8 = vcombine.low %v598_v47, %v606_v48  ;;  %v639_v9 = vcombine.low %v614_v55, %v622_v56  ;;  %v953_v16 = vcombine.low %v934_v53, %v950_v54  ;;  %v954_v20 = vcombine.high %v934_v53, %v950_v54 }
 0x24b   : > { %v859_v57 = vrot.slane %v851_v51, %v3376_v36  ;;  %v875_v58 = vrot.slane %v867_v50, %v3376_v36  ;;  %v866_v61 = vrot.slane %v852_v49, %v3376_v36  ;;  %v882_v62 = vrot.slane %v868_v52, %v3376_v36 }
 0x24c   : > { %v631_v24 = vrot.slane %v623_v8, %v3376_v36  ;;  %v647_v25 = vrot.slane %v639_v9, %v3376_v36  ;;  %v624_v26 = vcombine.high %v598_v47, %v606_v48  ;;  %v640_v30 = vcombine.high %v614_v55, %v622_v56 }
 0x24d   : > { %v883_v3 = vcombine.low %v859_v57, %v875_v58  ;;  %v884_v4 = vcombine.high %v859_v57, %v875_v58  ;;  %v885_v5 = vcombine.low %v866_v61, %v882_v62  ;;  %v886_v6 = vcombine.high %v866_v61, %v882_v62 }
 0x24e   : > { %v655_v31 = vcombine.low %v631_v24, %v647_v25  ;;  %v656_v32 = vcombine.high %v631_v24, %v647_v25  ;;  %v638_v33 = vrot.slane %v624_v26, %v3376_v36  ;;  %v654_v34 = vrot.slane %v640_v30, %v3376_v36 }
 0x24f   : > { %v2756_v11 = vpack.c.bf16 %v951_v1, %v883_v3  ;;  %v2762_v15 = vpack.c.bf16 %v952_v2, %v884_v4  ;;  %v2768_v21 = vpack.c.bf16 %v953_v16, %v885_v5  ;;  %v2774_v22 = vpack.c.bf16 %v954_v20, %v886_v6 }
 0x250   : > { %v657_v35 = vcombine.low %v638_v33, %v654_v34  ;;  %v658_v37 = vcombine.high %v638_v33, %v654_v34  ;;  %v1612_v38 = vand.u32 127, %v392_v17  ;;  %v2602_v39 = vadd.s32 4294967294, %v3346_v23 }
 0x251   : > { %2758 = vmatprep.subr.msk.bf16.mxu1 %vm3456_vm2, %v2756_v11  ;;  %2764 = vmatprep.subr.msk.bf16.mxu0 %vm3456_vm2, %v2762_v15 }
 0x252   : > { %2761 = vmatpush3.bf16.xpose.msk.msra.mxu1 %vm3456_vm2, %v2756_v11  ;;  %2767 = vmatpush3.bf16.xpose.msk.msra.mxu0 %vm3456_vm2, %v2762_v15  ;;  %vm1615_vm3 = vcmp.ge.s32.totalorder %v1612_v38, %v2602_v39  ;;  %vm1619_vm4 = vcmp.le.s32.totalorder %v1612_v38, %v1617_v59  ;;  %vm1627_vm10 = vcmp.lt.s32.totalorder %v1612_v38, 1 }
 0x253   : > { %2770 = vmatprep.subr.msk.bf16.mxu1 %vm3456_vm2, %v2768_v21  ;;  %2776 = vmatprep.subr.msk.bf16.mxu0 %vm3456_vm2, %v2774_v22  ;;  %vm1621_vm7 = vmand %vm1615_vm3, %vm1619_vm4 }
 0x254   : > { %vm1625_vm11 = vmor %vm1621_vm7, %vm1623_vm8 }
 0x255   : > { %vm3501_vm14 = vmor %vm1625_vm11, %vm1627_vm10 }
 0x259   : > { %2686 = vmatmul.mubr.msk.f32.vlgmr.msra.gmra.mrb[0].mxu1 %vm1251_vm1, %v655_v31  ;;  %2693 = vmatmul.mubr.msk.f32.vlgmr.msra.gmra.mrb[2].mxu0 %vm1251_vm1, %v656_v32 }
 0x25a   : > { %2773 = vmatpush3.bf16.xpose.msk.msra.mxu1 %vm3456_vm2, %v2768_v21  ;;  %2699 = vmatprep.mubr.msk.f32.mxu1 %vm1251_vm1, %v589_v63  ;;  %v1610_v63 = vadd.s32 8, %v3346_v23 }
 0x25b   : > { %2779 = vmatpush3.bf16.xpose.msk.msra.mxu0 %vm3456_vm2, %v2774_v22  ;;  %2706 = vmatprep.mubr.msk.f32.mxu0 %vm1251_vm1, %v590_v0 }
 0x25c   : > { %v2603_v60 = vadd.s32 4294967294, %v1610_v63  ;;  %v1618_v0 = vadd.s32 2, %v1610_v63 }
 0x25e   : > { %vm1616_vm5 = vcmp.ge.s32.totalorder %v1612_v38, %v2603_v60  ;;  %vm1620_vm6 = vcmp.le.s32.totalorder %v1612_v38, %v1618_v0 }
 0x25f   : > { %vm1622_vm9 = vmand %vm1616_vm5, %vm1620_vm6 }
 0x260   : > { %vm3497_vm12 = vmor %vm1622_vm9, %vm1627_vm10 }
 0x261   : > { %2700 = vmatmul.mubr.msk.f32.vlgmr.msra.gmra.mrb[2].mxu1 %vm1251_vm1, %v657_v35 }
 0x262   : > { %2707 = vmatmul.mubr.msk.f32.vlgmr.msra.gmra.mrb[4].mxu0 %vm1251_vm1, %v658_v37 }
 0x32c   : > { %v2687_v42 = vpop.f32.mrb[0].mxu1  ;;  %v2694_v43 = vpop.f32.mrb[2].mxu0 }
 0x32d   : > { %v1601_v44 = vmul.f32 0.35355338, %v2687_v42  ;;  %v1330_v45 = vpop.f32.mrb[1].mxu1  ;;  %v1417_v46 = vpop.f32.mrb[3].mxu0  ;;  %v1603_v50 = vmul.f32 0.35355338, %v2694_v43 }
 0x32e   : > { %v1600_v41 = vmul.f32 0.35355338, %v1330_v45  ;;  %v1602_v47 = vmul.f32 0.35355338, %v1417_v46 }
 0x32f   : > { %v1635_v23 = vsel %vm3497_vm12, %v1601_v44, -inf  ;;  %v3516_v61 = vsel %vm3497_vm12, %v1603_v50, -inf }
 0x330   : > { %v1646_v48 = vsel %vm1642_vm13, %v1635_v23, -inf  ;;  %v1634_v51 = vsel %vm3501_vm14, %v1600_v41, -inf  ;;  %v1636_v52 = vsel %vm3501_vm14, %v1602_v47, -inf  ;;  %v1652_v1 = vsel %vm1642_vm13, %v3516_v61, -inf }
 0x331   : > { %1647 = vmax.xlane.f32.xlu1 %v1646_v48  ;;  %v1643_v49 = vsel %vm1642_vm13, %v1634_v51, -inf  ;;  %v1649_v56 = vsel %vm1642_vm13, %v1636_v52, -inf }
 0x332   : > { %1644 = vmax.xlane.f32.xlu0 %v1643_v49 }
 0x334   : > { %v2701_v53 = vpop.f32.mrb[2].mxu1 }
 0x335   : > { %v2708_v54 = vpop.f32.mrb[4].mxu0  ;;  %v1504_v55 = vpop.f32.mrb[3].mxu1  ;;  %v1605_v57 = vmul.f32 0.35355338, %v2701_v53 }
 0x336   : > { %v1591_v58 = vpop.f32.mrb[5].mxu0  ;;  %1650 = vmax.xlane.f32.xlu0 %v1649_v56  ;;  %v1607_v3 = vmul.f32 0.35355338, %v2708_v54  ;;  %v1604_v8 = vmul.f32 0.35355338, %v1504_v55 }
 0x337   : > { %v1606_v62 = vmul.f32 0.35355338, %v1591_v58  ;;  %v3526_v4 = vsel %vm3497_vm12, %v1605_v57, -inf }
 0x338   : > { %v1658_v5 = vsel %vm1642_vm13, %v3526_v4, -inf  ;;  %v3532_v6 = vsel %vm3497_vm12, %v1607_v3, -inf }
 0x339   : > { %v3522_v2 = vsel %vm3501_vm14, %v1606_v62, -inf  ;;  %v1664_v7 = vsel %vm1642_vm13, %v3532_v6, -inf }
 0x33a   : > { %1653 = vmax.xlane.f32.xlu0 %v1652_v1 }
 0x33e   : > { %1659 = vmax.xlane.f32.xlu0 %v1658_v5 }
 0x342   : > { %955 = vrot.lane.b32.xlu1 %v3325_v12, %s3085_s13  ;;  %1665 = vmax.xlane.f32.xlu0 %v1664_v7  ;;  %v3550_v12 = vsel %vm3501_vm14, %v1604_v8, -inf }
 0x346   : > { %959 = vrot.lane.b32.xlu1 %v3343_v19, %s3085_s13  ;;  %v1655_v19 = vsel %vm1642_vm13, %v3550_v12, -inf }
 0x34a   : > { %961 = vrot.lane.b32.xlu1 %v3337_v14, %s3085_s13  ;;  %v1661_v14 = vsel %vm1642_vm13, %v3522_v2, -inf }
 0x358   : > { %957 = vrot.lane.b32.xlu0 %v3321_v10, %s3085_s13 }
 0x35c   : > { %963 = vrot.lane.b32.xlu0 %v3341_v18, %s3085_s13 }
 0x360   : > { %967 = vrot.lane.b32.xlu0 %v3358_v28, %s3085_s13 }
 0x36e   : > { %1656 = vmax.xlane.f32.xlu1 %v1655_v19 }
 0x372   : > { %1662 = vmax.xlane.f32.xlu1 %v1661_v14 }
 0x383   : > { %965 = vrot.lane.b32.xlu1 %v3335_v13, %s3085_s13 }
 0x3be   : > { %v1648_v10 = vpop.xlane.xlu1 %1647 }
 0x3bf   : > { %v1668_v18 = vsub.f32 %v1635_v23, %v1648_v10  ;;  %v1645_v9 = vpop.xlane.xlu0 %1644 }
 0x3c0   : > { %v1667_v28 = vsub.f32 %v1634_v51, %v1645_v9 }
 0x3c1   : > { %v1677_v11 = vmul.f32 1.442695, %v1668_v18 }
 0x3c2   : > { %v1675_v15 = vmul.f32 1.442695, %v1667_v28  ;;  %v956_v35 = vpop.permute.xlu1 %955 }
 0x3c3   : > { %2884 = vpow2.f32 %v1677_v11  ;;  %v1651_v16 = vpop.xlane.xlu0 %1650 }
 0x3c4   : > { %2886 = vpow2.f32 %v1675_v15  ;;  %v1669_v20 = vsub.f32 %v1636_v52, %v1651_v16 }
 0x3c6   : > { %v1679_v21 = vmul.f32 1.442695, %v1669_v20  ;;  %v960_v39 = vpop.permute.xlu1 %959 }
 0x3c7   : > { %v1654_v22 = vpop.xlane.xlu0 %1653 }
 0x3c8   : > { %2888 = vpow2.f32 %v1679_v21  ;;  %v1670_v9 = vsub.f32 %v3516_v61, %v1654_v22 }
 0x3ca   : > { %v1681_v28 = vmul.f32 1.442695, %v1670_v9  ;;  %v962_v11 = vpop.permute.xlu1 %961 }
 0x3cb   : > { %v1660_v24 = vpop.xlane.xlu0 %1659 }
 0x3cc   : > { %2890 = vpow2.f32 %v1681_v28  ;;  %v1672_v15 = vsub.f32 %v3526_v4, %v1660_v24 }
 0x3cd   : > { %v3558_v25 = vpop.eup %2884 }
 0x3ce   : > { %v3560_v26 = vpop.eup %2886  ;;  %v1694_v13 = vsel %vm1642_vm13, %v3558_v25, 0.0  ;;  %v1685_v21 = vmul.f32 1.442695, %v1672_v15 }
 0x3cf   : > { %1695 = vadd.xlane.f32.xlu0 %v1694_v13  ;;  %v3564_v30 = vpop.xlane.xlu0 %1665  ;;  %v1691_v31 = vsel %vm1642_vm13, %v3560_v26, 0.0 }
 0x3d0   : > { %1692 = vadd.xlane.f32.xlu1 %v1691_v31  ;;  %v1674_v13 = vsub.f32 %v3532_v6, %v3564_v30 }
 0x3d2   : > { %v3568_v32 = vpop.eup %2888  ;;  %v1689_v61 = vmul.f32 1.442695, %v1674_v13 }
 0x3d3   : > { %v3570_v33 = vpop.permute.xlu0 %957  ;;  %v1697_v34 = vsel %vm1642_vm13, %v3568_v32, 0.0 }
 0x3d4   : > { %1698 = vadd.xlane.f32.xlu0 %v1697_v34 }
 0x3d7   : > { %v964_v37 = vpop.permute.xlu0 %963 }
 0x3d8   : > { %v979_v63 = vcombine.low %v956_v35, %v964_v37  ;;  %v980_v38 = vcombine.high %v956_v35, %v964_v37  ;;  %v3614_v37 = vpop.eup %2890 }
 0x3d9   : > { %v1700_v4 = vsel %vm1642_vm13, %v3614_v37, 0.0 }
 0x3da   : > { %v987_v42 = vrot.slane %v979_v63, %v3361_v29  ;;  %v994_v43 = vrot.slane %v980_v38, %v3361_v29 }
 0x3db   : > { %v968_v59 = vpop.permute.xlu0 %967 }
 0x3dc   : > { %v995_v60 = vcombine.low %v960_v39, %v968_v59  ;;  %v996_v0 = vcombine.high %v960_v39, %v968_v59 }
 0x3de   : > { %v1003_v17 = vrot.slane %v995_v60, %v3361_v29  ;;  %v1010_v44 = vrot.slane %v996_v0, %v3361_v29 }
 0x3e0   : > { %v1011_v45 = vcombine.low %v987_v42, %v1003_v17  ;;  %v1012_v46 = vcombine.high %v987_v42, %v1003_v17  ;;  %v1027_v40 = vcombine.low %v994_v43, %v1010_v44  ;;  %v1028_v41 = vcombine.high %v994_v43, %v1010_v44 }
 0x3e1   : > { %969 = vrot.lane.b32.xlu1 %v3356_v27, %s3085_s13  ;;  %s3008_s13 = scalar_lea.vmem %s3007_s28, 512 }
 0x3e2   : > { %v1019_v47 = vrot.slane %v1011_v45, %v3376_v36  ;;  %v1026_v23 = vrot.slane %v1012_v46, %v3376_v36  ;;  %v1035_v48 = vrot.slane %v1027_v40, %v3376_v36  ;;  %v1042_v51 = vrot.slane %v1028_v41, %v3376_v36  ;;  %p3010_p9 = scmp.lt.s32.totalorder %s3008_s13, %s3002_s6 }
 0x3e4   : > { %v1115_v49 = vcombine.low %v1019_v47, %v1026_v23  ;;  %v2582_v50 = vcombine.high %v1019_v47, %v1026_v23  ;;  %v1131_v52 = vcombine.low %v1035_v48, %v1042_v51  ;;  %v2583_v53 = vcombine.high %v1035_v48, %v1042_v51  ;;  %p3011_p12 = por %p3010_p9, %p3009_p7 }
 0x3e6   : > { %v1122_v54 = vrot.slane %v1115_v49, %v3361_v29  ;;  %v1130_v55 = vrot.slane %v2582_v50, %v3361_v29  ;;  %v1138_v56 = vrot.slane %v1131_v52, %v3361_v29  ;;  %v1146_v27 = vrot.slane %v2583_v53, %v3361_v29  ;;  %p3012_p1 = pnand %p3011_p12, %p3005_p3 }
 0x3e8   : > { %v1147_v57 = vcombine.low %v1122_v54, %v1130_v55  ;;  %v1163_v58 = vcombine.low %v1138_v56, %v1146_v27  ;;  %v1148_v62 = vcombine.high %v1122_v54, %v1130_v55  ;;  %v1164_v1 = vcombine.high %v1138_v56, %v1146_v27 }
 0x3ea   : > { %v3589_v3 = vrot.slane %v1147_v57, %v3376_v36  ;;  %v3592_v5 = vrot.slane %v1163_v58, %v3376_v36  ;;  %v3595_v7 = vrot.slane %v1148_v62, %v3376_v36  ;;  %v3598_v8 = vrot.slane %v1164_v1, %v3376_v36 }
 0x3ec   : > { %v1179_v19 = vcombine.low %v3589_v3, %v3592_v5  ;;  %v1180_v14 = vcombine.high %v3589_v3, %v3592_v5  ;;  %v1181_v10 = vcombine.low %v3595_v7, %v3598_v8  ;;  %v1182_v18 = vcombine.high %v3595_v7, %v3598_v8 }
 0x3fb   : > { %v1657_v16 = vpop.xlane.xlu1 %1656 }
 0x3fc   : > { %v1671_v20 = vsub.f32 %v3550_v12, %v1657_v16 }
 0x3fe   : > { %v1683_v31 = vmul.f32 1.442695, %v1671_v20 }
 0x3ff   : > { %v1663_v34 = vpop.xlane.xlu1 %1662 }
 0x400   : > { %2892 = vpow2.f32 %v1683_v31  ;;  %v1673_v35 = vsub.f32 %v3522_v2, %v1663_v34 }
 0x401   : > { %2894 = vpow2.f32 %v1685_v21 }
 0x402   : > { %v1687_v22 = vmul.f32 1.442695, %v1673_v35 }
 0x403   : > { %v966_v59 = vpop.permute.xlu1 %965 }
 0x404   : > { %2896 = vpow2.f32 %v1687_v22  ;;  %v1047_v0 = vcombine.low %v3570_v33, %v966_v59  ;;  %v1048_v42 = vcombine.high %v3570_v33, %v966_v59 }
 0x405   : > { %1701 = vadd.xlane.f32.xlu1 %v1700_v4  ;;  %2898 = vpow2.f32 %v1689_v61 }
 0x406   : > { %v1055_v45 = vrot.slane %v1047_v0, %v3361_v29  ;;  %v1062_v46 = vrot.slane %v1048_v42, %v3361_v29 }
 0x40a   : > { %v3618_v12 = vpop.eup %2892 }
 0x40b   : > { %v1703_v6 = vsel %vm1642_vm13, %v3618_v12, 0.0  ;;  %v3622_v24 = vpop.eup %2894 }
 0x40c   : > { %1704 = vadd.xlane.f32.xlu0 %v1703_v6  ;;  %v1706_v30 = vsel %vm1642_vm13, %v3622_v24, 0.0 }
 0x40e   : > { %v3624_v2 = vpop.eup %2896 }
 0x40f   : > { %v1709_v63 = vsel %vm1642_vm13, %v3624_v2, 0.0  ;;  %v3630_v38 = vpop.eup %2898 }
 0x410   : > { %1707 = vadd.xlane.f32.xlu0 %v1706_v30  ;;  %1710 = vadd.xlane.f32.xlu1 %v1709_v63  ;;  %v1712_v39 = vsel %vm1642_vm13, %v3630_v38, 0.0 }
 0x414   : > { %1713 = vadd.xlane.f32.xlu0 %v1712_v39 }
 0x45c   : > { %v1696_v40 = vpop.xlane.xlu0 %1695 }
 0x45d   : > { %v1693_v60 = vpop.xlane.xlu1 %1692 }
 0x45e   : > { %2900 = vrcp.f32 %v1693_v60 }
 0x45f   : > { %2902 = vrcp.f32 %v1696_v40 }
 0x461   : > { %v970_v43 = vpop.permute.xlu1 %969  ;;  %v1699_v56 = vpop.xlane.xlu0 %1698 }
 0x462   : > { %v1063_v17 = vcombine.low %v962_v11, %v970_v43  ;;  %v1064_v44 = vcombine.high %v962_v11, %v970_v43  ;;  %2904 = vrcp.f32 %v1699_v56 }
 0x464   : > { %v1071_v41 = vrot.slane %v1063_v17, %v3361_v29  ;;  %v1078_v47 = vrot.slane %v1064_v44, %v3361_v29 }
 0x466   : > { %v1079_v23 = vcombine.low %v1055_v45, %v1071_v41  ;;  %v1080_v48 = vcombine.high %v1055_v45, %v1071_v41  ;;  %v1095_v51 = vcombine.low %v1062_v46, %v1078_v47  ;;  %v1096_v49 = vcombine.high %v1062_v46, %v1078_v47 }
 0x468   : > { %v2901_v50 = vpop.eup %2900  ;;  %v1087_v52 = vrot.slane %v1079_v23, %v3376_v36  ;;  %v1094_v33 = vrot.slane %v1080_v48, %v3376_v36  ;;  %v1103_v53 = vrot.slane %v1095_v51, %v3376_v36  ;;  %v1110_v54 = vrot.slane %v1096_v49, %v3376_v36 }
 0x469   : > { %v1723_v55 = vmul.f32 %v2901_v50, %v3560_v26  ;;  %v2903_v4 = vpop.eup %2902 }
 0x46a   : > { %v1183_v27 = vcombine.low %v1087_v52, %v1094_v33  ;;  %v2584_v57 = vcombine.high %v1087_v52, %v1094_v33  ;;  %v1199_v58 = vcombine.low %v1103_v53, %v1110_v54  ;;  %v2585_v62 = vcombine.high %v1103_v53, %v1110_v54 }
 0x46b   : > { %2713 = vmatprep.mubr.msk.f32.mxu1 %vm1642_vm13, %v1723_v55  ;;  %v1724_v39 = vmul.f32 %v2903_v4, %v3558_v25 }
 0x46c   : > { %v1190_v1 = vrot.slane %v1183_v27, %v3361_v29  ;;  %v1198_v9 = vrot.slane %v2584_v57, %v3361_v29  ;;  %v1206_v28 = vrot.slane %v1199_v58, %v3361_v29  ;;  %v1214_v11 = vrot.slane %v2585_v62, %v3361_v29  ;;  %v2905_v6 = vpop.eup %2904 }
 0x46d   : > { %v1725_v59 = vmul.f32 %v2905_v6, %v3568_v32 }
 0x46e   : > { %v1215_v15 = vcombine.low %v1190_v1, %v1198_v9  ;;  %v1231_v16 = vcombine.low %v1206_v28, %v1214_v11  ;;  %v1216_v26 = vcombine.high %v1190_v1, %v1198_v9  ;;  %v1232_v20 = vcombine.high %v1206_v28, %v1214_v11 }
 0x470   : > { %v1223_v21 = vrot.slane %v1215_v15, %v3376_v36  ;;  %v1239_v13 = vrot.slane %v1231_v16, %v3376_v36  ;;  %v1230_v35 = vrot.slane %v1216_v26, %v3376_v36  ;;  %v1246_v61 = vrot.slane %v1232_v20, %v3376_v36 }
 0x472   : > { %v1247_v31 = vcombine.low %v1223_v21, %v1239_v13  ;;  %v1248_v34 = vcombine.high %v1223_v21, %v1239_v13  ;;  %v1249_v63 = vcombine.low %v1230_v35, %v1246_v61  ;;  %v1250_v5 = vcombine.high %v1230_v35, %v1246_v61 }
 0x474   : > { %v2780_v22 = vpack.c.bf16 %v1247_v31, %v1179_v19  ;;  %v2784_v30 = vpack.c.bf16 %v1248_v34, %v1180_v14  ;;  %v2788_v19 = vpack.c.bf16 %v1249_v63, %v1181_v10  ;;  %v2792_v10 = vpack.c.bf16 %v1250_v5, %v1182_v18 }
 0x476   : > { %2781 = vmatprep.subr.bf16.mxu1 %v2780_v22 }
 0x477   : > { %2783 = vmatpush3.bf16.msra.mxu1 %v2780_v22 }
 0x478   : > { %2785 = vmatprep.subr.bf16.mxu1 %v2784_v30 }
 0x47a   : > { %2714 = vmatmul.mubr.msk.f32.vlgmr.msra.gmra.mrb[4].mxu1 %vm1642_vm13, %v1724_v39 }
 0x47b   : > { %2787 = vmatpush3.bf16.msra.mxu1 %v2784_v30  ;;  %2720 = vmatprep.mubr.msk.f32.mxu1 %vm1642_vm13, %v1725_v59 }
 0x47c   : > { %2789 = vmatprep.subr.bf16.mxu1 %v2788_v19 }
 0x492   : > { %v1702_v60 = vpop.xlane.xlu1 %1701 }
 0x493   : > { %2906 = vrcp.f32 %v1702_v60 }
 0x499   : > { %v1705_v3 = vpop.xlane.xlu0 %1704 }
 0x49a   : > { %2908 = vrcp.f32 %v1705_v3 }
 0x49d   : > { %v2907_v14 = vpop.eup %2906  ;;  %v1708_v25 = vpop.xlane.xlu0 %1707 }
 0x49e   : > { %v1711_v0 = vpop.xlane.xlu1 %1710  ;;  %v1726_v32 = vmul.f32 %v2907_v14, %v3614_v37  ;;  %2910 = vrcp.f32 %v1708_v25 }
 0x49f   : > { %2912 = vrcp.f32 %v1711_v0 }
 0x4a0   : > { %2721 = vmatmul.mubr.msk.f32.vlgmr.msra.gmra.mrb[6].mxu1 %vm1642_vm13, %v1726_v32 }
 0x4a1   : > { %2791 = vmatpush3.bf16.msra.mxu1 %v2788_v19  ;;  %v1714_v42 = vpop.xlane.xlu0 %1713 }
 0x4a2   : > { %2914 = vrcp.f32 %v1714_v42  ;;  %2793 = vmatprep.subr.bf16.mxu1 %v2792_v10 }
 0x4a4   : > { %v2909_v43 = vpop.eup %2908 }
 0x4a5   : > { %v1727_v17 = vmul.f32 %v2909_v43, %v3618_v12 }
 0x4a7   : > { %2727 = vmatprep.mubr.msk.f32.mxu1 %vm1642_vm13, %v1727_v17 }
 0x4a8   : > { %v2911_v44 = vpop.eup %2910 }
 0x4a9   : > { %v2913_v45 = vpop.eup %2912  ;;  %v1728_v37 = vmul.f32 %v2911_v44, %v3622_v24 }
 0x4aa   : > { %v1729_v46 = vmul.f32 %v2913_v45, %v3624_v2 }
 0x4ab   : > { %2728 = vmatmul.mubr.msk.f32.vlgmr.msra.gmra.mrb[8].mxu1 %vm1642_vm13, %v1728_v37 }
 0x4ac   : > { %v2915_v40 = vpop.eup %2914  ;;  %2795 = vmatpush3.bf16.msra.mxu1 %v2792_v10  ;;  %2734 = vmatprep.mubr.msk.f32.mxu1 %vm1642_vm13, %v1729_v46 }
 0x4ad   : > { %v1730_v7 = vmul.f32 %v2915_v40, %v3630_v38 }
 0x4af   : > { %2735 = vmatmul.mubr.msk.f32.vlgmr.msra.gmra.mrb[10].mxu1 %vm1642_vm13, %v1730_v7 }
 0x54d   : > { %v2715_v8 = vpop.f32.mrb[4].mxu1 }
 0x54e   : > { %v1803_v18 = vpop.f32.mrb[5].mxu1 }
 0x573   : > { %v2722_v12 = vpop.f32.mrb[6].mxu1 }
 0x574   : > { %v1884_v41 = vpop.f32.mrb[7].mxu1 }
 0x57e   : > { %v2729_v47 = vpop.f32.mrb[8].mxu1 }
 0x57f   : > { %v2123_v23 = vcombine.low %v2715_v8, %v2729_v47  ;;  %v2124_v48 = vcombine.high %v2715_v8, %v2729_v47  ;;  %v1965_v24 = vpop.f32.mrb[9].mxu1 }
 0x580   : > { %v2055_v51 = vcombine.low %v1803_v18, %v1965_v24  ;;  %v2056_v2 = vcombine.high %v1803_v18, %v1965_v24 }
 0x581   : > { %v2131_v38 = vrot.slane %v2123_v23, %v3361_v29  ;;  %v2138_v55 = vrot.slane %v2124_v48, %v3361_v29 }
 0x582   : > { %v2736_v49 = vpop.f32.mrb[10].mxu1  ;;  %v2063_v57 = vrot.slane %v2055_v51, %v3361_v29  ;;  %v2070_v58 = vrot.slane %v2056_v2, %v3361_v29  ;;  %v2358_v2 = vld [vmem:[#allocation7] sm:$0xff] }
 0x583   : > { %v2139_v50 = vcombine.low %v2722_v12, %v2736_v49  ;;  %v2140_v52 = vcombine.high %v2722_v12, %v2736_v49  ;;  %v2046_v33 = vpop.f32.mrb[11].mxu1  ;;  %v2359_v49 = vld [vmem:[#allocation7 + $0x8] sm:$0xff] }
 0x584   : > { %v2071_v53 = vcombine.low %v1884_v41, %v2046_v33  ;;  %v2072_v54 = vcombine.high %v1884_v41, %v2046_v33 }
 0x585   : > { %v2147_v56 = vrot.slane %v2139_v50, %v3361_v29  ;;  %v2154_v27 = vrot.slane %v2140_v52, %v3361_v29 }
 0x586   : > { %v2079_v62 = vrot.slane %v2071_v53, %v3361_v29  ;;  %v2086_v1 = vrot.slane %v2072_v54, %v3361_v29  ;;  %v2360_v54 = vld [vmem:[#allocation7 + $0x10] sm:$0xff] }
 0x587   : > { %v2155_v9 = vcombine.low %v2131_v38, %v2147_v56  ;;  %v2156_v28 = vcombine.high %v2131_v38, %v2147_v56  ;;  %v2171_v11 = vcombine.low %v2138_v55, %v2154_v27  ;;  %v2172_v15 = vcombine.high %v2138_v55, %v2154_v27  ;;  %v2361_v38 = vld [vmem:[#allocation7 + $0x18] sm:$0xff] }
 0x588   : > { %v2087_v16 = vcombine.low %v2063_v57, %v2079_v62  ;;  %v2088_v26 = vcombine.high %v2063_v57, %v2079_v62  ;;  %v2103_v20 = vcombine.low %v2070_v58, %v2086_v1  ;;  %v2104_v21 = vcombine.high %v2070_v58, %v2086_v1 }
 0x589   : > { %v2163_v13 = vrot.slane %v2155_v9, %v3376_v36  ;;  %v2170_v31 = vrot.slane %v2156_v28, %v3376_v36  ;;  %v2179_v34 = vrot.slane %v2171_v11, %v3376_v36  ;;  %v2186_v35 = vrot.slane %v2172_v15, %v3376_v36 }
 0x58a   : > { %v2095_v61 = vrot.slane %v2087_v16, %v3376_v36  ;;  %v2102_v22 = vrot.slane %v2088_v26, %v3376_v36  ;;  %v2111_v4 = vrot.slane %v2103_v20, %v3376_v36  ;;  %v2118_v6 = vrot.slane %v2104_v21, %v3376_v36 }
 0x58b   : > { %v2259_v30 = vcombine.low %v2163_v13, %v2170_v31  ;;  %v2614_v63 = vcombine.high %v2163_v13, %v2170_v31  ;;  %v2275_v39 = vcombine.low %v2179_v34, %v2186_v35  ;;  %v2615_v59 = vcombine.high %v2179_v34, %v2186_v35  ;;  %v2616_v34 = vld [vmem:[%s3780_s4] ss:$0 sm:$0xff] }
 0x58c   : > { %v2191_v19 = vcombine.low %v2095_v61, %v2102_v22  ;;  %v2612_v60 = vcombine.high %v2095_v61, %v2102_v22  ;;  %v2207_v3 = vcombine.low %v2111_v4, %v2118_v6  ;;  %v2613_v5 = vcombine.high %v2111_v4, %v2118_v6 }
 0x58d   : > { %v2266_v14 = vrot.slane %v2259_v30, %v3361_v29  ;;  %v2274_v25 = vrot.slane %v2614_v63, %v3361_v29  ;;  %v2282_v0 = vrot.slane %v2275_v39, %v3361_v29  ;;  %v2290_v32 = vrot.slane %v2615_v59, %v3361_v29 }
 0x58e   : > { %v2198_v10 = vrot.slane %v2191_v19, %v3361_v29  ;;  %v2206_v42 = vrot.slane %v2612_v60, %v3361_v29  ;;  %v2214_v43 = vrot.slane %v2207_v3, %v3361_v29  ;;  %v2222_v17 = vrot.slane %v2613_v5, %v3361_v29 }
 0x58f   : > { %v2292_v44 = vcombine.high %v2266_v14, %v2274_v25  ;;  %v2308_v45 = vcombine.high %v2282_v0, %v2290_v32  ;;  %v2291_v37 = vcombine.low %v2266_v14, %v2274_v25  ;;  %v2307_v46 = vcombine.low %v2282_v0, %v2290_v32 }
 0x590   : > { %v2224_v40 = vcombine.high %v2198_v10, %v2206_v42  ;;  %v2240_v7 = vcombine.high %v2214_v43, %v2222_v17  ;;  %v2223_v8 = vcombine.low %v2198_v10, %v2206_v42  ;;  %v2239_v18 = vcombine.low %v2214_v43, %v2222_v17 }
 0x591   : > { %v2306_v12 = vrot.slane %v2292_v44, %v3376_v36  ;;  %v2322_v41 = vrot.slane %v2308_v45, %v3376_v36  ;;  %v2299_v47 = vrot.slane %v2291_v37, %v3376_v36  ;;  %v2315_v23 = vrot.slane %v2307_v46, %v3376_v36 }
 0x592   : > { %v2238_v48 = vrot.slane %v2224_v40, %v3376_v36  ;;  %v2254_v29 = vrot.slane %v2240_v7, %v3376_v36  ;;  %v2231_v24 = vrot.slane %v2223_v8, %v3376_v36  ;;  %v2247_v51 = vrot.slane %v2239_v18, %v3376_v36 }
 0x593   : > { %v2325_v50 = vcombine.low %v2306_v12, %v2322_v41  ;;  %v2324_v52 = vcombine.high %v2299_v47, %v2315_v23  ;;  %v2326_v33 = vcombine.high %v2306_v12, %v2322_v41  ;;  %v2323_v53 = vcombine.low %v2299_v47, %v2315_v23 }
 0x594   : > { %v2258_v55 = vcombine.high %v2238_v48, %v2254_v29  ;;  %v2256_v56 = vcombine.high %v2231_v24, %v2247_v51  ;;  %v2257_v27 = vcombine.low %v2238_v48, %v2254_v29  ;;  %v2255_v57 = vcombine.low %v2231_v24, %v2247_v51 }
 0x595   : > { %2339 = vrot.lane.b32.xlu1 %v2325_v50, %s3086_s9  ;;  %2331 = vrot.lane.b32.xlu0 %v2324_v52, %s3087_s30  ;;  %v2796_v58 = vpack.c.bf16 %v2359_v49, %v2358_v2  ;;  %v2800_v62 = vpack.c.bf16 %v2361_v38, %v2360_v54 }
 0x597   : > { %2797 = vmatprep.subr.bf16.mxu0 %v2796_v58 }
 0x598   : > { %2799 = vmatpush3.bf16.msra.mxu0 %v2796_v58 }
 0x599   : > { %2345 = vrot.lane.b32.xlu0 %v2258_v55, %s3088_s11  ;;  %2329 = vrot.lane.b32.xlu1 %v2256_v56, %s3087_s30 }
 0x59a   : > { %2801 = vmatprep.subr.bf16.mxu0 %v2800_v62 }
 0x59c   : > { %2803 = vmatpush3.bf16.msra.mxu0 %v2800_v62 }
 0x59d   : > { %2337 = vrot.lane.b32.xlu1 %v2257_v27, %s3086_s9 }
 0x5a1   : > { %2347 = vrot.lane.b32.xlu1 %v2326_v33, %s3088_s11 }
 0x607   : > { %v2340_v36 = vpop.permute.xlu1 %2339  ;;  %v2332_v1 = vpop.permute.xlu0 %2331 }
 0x608   : > { %v2352_v15 = vsel %vm1251_vm1, %v2323_v53, %v2332_v1 }
 0x609   : > { %v2354_v21 = vsel %vm1642_vm13, %v2352_v15, %v2340_v36 }
 0x60b   : > { %v2330_v9 = vpop.permute.xlu1 %2329  ;;  %v2346_v16 = vpop.permute.xlu0 %2345 }
 0x60c   : > { %v2351_v28 = vsel %vm1251_vm1, %v2255_v57, %v2330_v9 }
 0x60f   : > { %v2338_v11 = vpop.permute.xlu1 %2337 }
 0x610   : > { %v2353_v26 = vsel %vm1642_vm13, %v2351_v28, %v2338_v11 }
 0x611   : > { %v2356_v20 = vsel %vm2355_vm15, %v2353_v26, %v2346_v16 }
 0x612   : > { %2745 = vmatprep.mubr.msk.f32.mxu0 %vm285_vm0, %v2356_v20 }
 0x613   : > { %v2348_v13 = vpop.permute.xlu1 %2347 }
 0x614   : > { %v2357_v31 = vsel %vm2355_vm15, %v2354_v21, %v2348_v13 }
 0x615   : > { %2746 = vmatmul.mubr.msk.f32.vlgmr.msra.gmra.mrb[6].mxu0 %vm285_vm0, %v2357_v31 }
 0x6e8   : > { %v2747_v35 = vpop.f32.mrb[6].mxu0 }
 0x6e9   : > { %v2447_v61 = vadd.f32 %v2747_v35, %v2616_v34  ;;  %v2441_v22 = vpop.f32.mrb[7].mxu0 }
 0x6ea   : > { %v2442_v4 = vadd.f32 %v2616_v34, %v2441_v22 }
 0x6eb   : > { %2451 = vst [vmem:[%s271_s8 + $0x8] sm:$0xff] %v2447_v61 }
 0x6ec   : > { %2450 = vst [vmem:[%s271_s8] sm:$0xff] %v2442_v4 }
 0x6ed   : > { %3015 = shalt.err (!%p3012_p1)
}
 0x6ee   : > { %s3016_s9 = scalar_lea.hbm %s3731_s16, 256  ;;  %s3020_s7 = scalar_lea.hbm %s3781_s5, 512 }
 0x6ef   : > { %p3017_p13 = scmp.ne.s32.totalorder %s3731_s16, %s3016_s9  ;;  %p3021_p4 = scmp.lt.u32.totalorder %s3731_s16, %s3781_s5 }
 0x6f0   : > { %p3022_p5 = scmp.lt.u32.totalorder %s3020_s7, %s3016_s9  ;;  %p3024_p11 = scmp.lt.u32.totalorder %s3016_s9, %s3731_s16 }
 0x6f1   : > { %p3018_p6 = pnand %p3017_p13, %p3801_p0 }
 0x6f2   : > { %p3023_p8 = por %p3022_p5, %p3021_p4 }
 0x6f3   : > { %p3019_p10 = pneg %p3018_p6 }
 0x6f4   : > { %p3025_p2 = por %p3024_p11, %p3023_p8 }
 0x6f6   : > { %p3026_p3 = pnand %p3025_p2, %p3019_p10 }
 0x6f8   : > { %3029 = shalt.err (!%p3026_p3)
}
 0x6f9   : > { %s3090_s26 = smov 128  }
 0x6fa   : > { %2814 = dma.vmem_to_hbm [thread:$0]  (%p3801_p0), %s3726_s12, 256, %s3731_s16, %s2453_s10, %s3090_s26, %s3090_s26, %s3087_s30  }
 0x6fb PF: > { %s2481_s15 = sand.u32 1, %s3060_s18   ;;  %p3802_p7 = scmp.ne.s32.totalorder %s3786_s25, 0 }
 0x6fc   : > { %p3803_p9 = scmp.ge.s32.totalorder %s3072_s21, 2  ;;  %s2482_s6 = scalar_lea.sflag [#allocation4], %s2481_s15 }
 0x6fe   : > { %p2828_p12 = pnand %p3803_p9, %p3802_p7 }
 0x700   : > { %3055 = dma.done.wait (!%p2828_p12), %s2482_s6, 256  }
 0x701   : > { %3057 = vsyncadd (!%p2828_p12), %s2482_s6, 4294967040  ;;  %p19_p1 = scmp.ge.s32.totalorder %s3237_s29, 4   ;;  %s3804_s18 = smov %s3064_s19 }
 0x702   : > { %s3805_s19 = smov %s3068_s20  ;;  %s3806_s20 = smov %s3253_s27 }
 0x703   : > { %s3807_s21 = smov %s3237_s29  ;;  %21 = sbr.rel (!%p19_p1) target bundleno = 6 (0x6), region = 93 }
 0x70a   :  { %2487 = vsyncpa [#allocation3], 1 }
 0x70b   :  { %2489 = vsyncpa [#allocation3 + $0x1], 1 }
 0x70c   :  { %2490 = vsyncpa [#allocation6], 1 }
 0x70d   :  { %2491 = vsyncpa [#allocation4], 1 }
 0x70e   :  { %2493 = vsyncpa [#allocation4 + $0x1], 1 }

</bundles_post_ra>
